<compile_context>
chip_gen: v6e
topology: v6e:2x2x1
jax: 0.10.0
libtpu: 0.0.40
codegen_flags: <defaults>
</compile_context>

<pallas_src>
import math

import jax
import jax.numpy as jnp
from jax.experimental import pallas as pl
from jax.experimental.pallas import tpu as pltpu


def _round_up(x, m):
    return ((x + m - 1) // m) * m


def _raw_wide_kernel(m_ref, x_ref, o_ref):
    # m_ref: (G, G)  coefficient matrix, resident across all grid steps
    # x_ref: (G, TN) lane-dense slab of batch-concatenated input columns
    # o_ref: (G, TN) output slab  (= M @ slab)
    o_ref[...] = jnp.dot(
        m_ref[...], x_ref[...], preferred_element_type=jnp.float32
    ).astype(o_ref.dtype)


def raw_forward(M, x, graph_size, *, target_tile_bytes=2 * 1024 * 1024):
    """Pallas equivalent of Raw.forward.

    M: (1, G, G) parameter
    x: any array whose elements reshape to (-1, G, G)
    returns: (B, 1, G, G) with out[b, 0] = M @ x[b]
    """
    G = graph_size
    x = x.reshape(-1, G, G)
    B = x.shape[0]
    N = B * G

    M2d = M.reshape(G, G)
    # Lane-dense layout: column block [b*G : (b+1)*G) of xw holds x[b].
    xw = jnp.transpose(x, (1, 0, 2)).reshape(G, N)
    # TODO(synk): the two XLA-side layout passes (transpose in / transpose out)
    # each cost one extra HBM pass; folding them into the kernel would need an
    # in-kernel lane<->sublane relayout that is not clearly cheaper for G=32.

    dsize = jnp.dtype(x.dtype).itemsize
    g_pad = _round_up(G, 8)  # sublane-padded rows of a (G, TN) VMEM tile

    # --- lane-tile size: multiple of 128 lanes, big enough to amortize the
    #     per-grid-step overhead, small enough that 4 double-buffered tiles
    #     stay well under the default scoped-VMEM limit on every chip. -------
    n_blocks = pl.cdiv(N, 128)                       # 128-lane blocks in N
    target_blocks = max(1, target_tile_bytes // (g_pad * 128 * dsize))
    if n_blocks > 1:
        # Keep at least 2 grid steps when possible so v7x's two TensorCores
        # both get work (neutral on single-core v5e/v6e).
        blocks_per_tile = max(1, min(target_blocks, pl.cdiv(n_blocks, 2)))
    else:
        blocks_per_tile = 1
    TN = 128 * blocks_per_tile
    grid = (pl.cdiv(N, TN),)          # ragged final block is masked by Pallas

    # VMEM budget: resident M (counted twice, conservative) + double-buffered
    # x tile + double-buffered out tile.
    vmem_needed = (2 * dsize * g_pad * _round_up(G, 128)
                   + 4 * dsize * g_pad * TN
                   + (1 << 20))
    vmem_limit = None
    if vmem_needed > 12 * 1024 * 1024:
        # Above v5e's 16 MiB scoped default (with headroom); cap well under
        # v7x's 64 MiB physical VMEM.
        vmem_limit = min(int(vmem_needed * 5 // 4), 48 * 1024 * 1024)

    cost = pl.CostEstimate(
        flops=2 * G * G * N,
        transcendentals=0,
        bytes_accessed=dsize * (G * G + 2 * G * N),
    )

    out_wide = pl.pallas_call(
        _raw_wide_kernel,
        out_shape=jax.ShapeDtypeStruct((G, N), x.dtype),
        grid_spec=pltpu.PrefetchScalarGridSpec(
            num_scalar_prefetch=0,
            grid=grid,
            in_specs=[
                pl.BlockSpec((G, G), lambda j: (0, 0)),    # M (resident)
                pl.BlockSpec((G, TN), lambda j: (0, j)),   # lane-dense x slab
            ],
            out_specs=pl.BlockSpec((G, TN), lambda j: (0, j)),
        ),
        compiler_params=pltpu.CompilerParams(
            dimension_semantics=("parallel",),
            vmem_limit_bytes=vmem_limit,
        ),
        cost_estimate=cost,
    )(M2d, xw)

    # Undo the lane-dense layout: (G, B*G) -> (B, G, G) -> (B, 1, G, G)
    out = out_wide.reshape(G, B, G).transpose(1, 0, 2)
    return out[:, None, :, :]


def init_raw_params(key, graph_size, dtype=jnp.float32):
    """Deterministic kaiming_normal_ init matching nn.init.kaiming_normal_
    on a (1, G, G) parameter: fan_in = G * G, gain = sqrt(2)."""
    G = graph_size
    fan_in = G * G
    std = math.sqrt(2.0) / math.sqrt(fan_in)
    return jax.random.normal(key, (1, G, G), dtype=dtype) * std


def raw_forward_ref(M, x, graph_size):
    """Pure-JAX reference of the PyTorch forward."""
    G = graph_size
    xr = x.reshape(-1, G, G)
    out = jnp.einsum(
        "ij,bjk->bik", M.reshape(G, G), xr, precision=jax.lax.Precision.HIGHEST
    )
    return out[:, None, :, :]


if __name__ == "__main__":
    GRAPH_SIZE = 32
    BATCH = 8  # B*G = 256 -> two 128-wide lane tiles (exercises the tiled path)

    key = jax.random.PRNGKey(0)
    k_m, k_x = jax.random.split(key)

    M = init_raw_params(k_m, GRAPH_SIZE)
    x = jax.random.normal(k_x, (BATCH, GRAPH_SIZE, GRAPH_SIZE), dtype=jnp.float32)

    fwd = jax.jit(lambda m, xx: raw_forward(m, xx, GRAPH_SIZE))
    y = fwd(M, x)
    y = jax.block_until_ready(y)

    y_ref = raw_forward_ref(M, x, GRAPH_SIZE)
    assert y.shape == (BATCH, 1, GRAPH_SIZE, GRAPH_SIZE), y.shape
    assert jnp.allclose(y, y_ref, atol=1e-4, rtol=1e-4), "mismatch vs reference"

    print("KERNEL_OK")
</pallas_src>

<mosaic_0001>
module attributes {stable_mosaic.version = 11 : i64} {
  func.func @_raw_wide_kernel(%arg0: i32, %arg1: memref<32x32xf32, #tpu.memory_space<vmem>>, %arg2: memref<32x128xf32, #tpu.memory_space<vmem>>, %arg3: memref<32x128xf32, #tpu.memory_space<vmem>>) attributes {dimension_semantics = [#tpu.dimension_semantics<parallel>], iteration_bounds = array<i64: 2>, scalar_prefetch = 0 : i64, scratch_operands = 0 : i64, tpu.core_type = #tpu.core_type<tc>, window_params = [{pipeline_mode = #tpu.pipeline_mode<synchronous>, transform_indices = @transform_0, window_bounds = array<i64: 32, 32>}, {transform_indices = @transform_1, window_bounds = array<i64: 32, 128>}, {transform_indices = @transform_2, window_bounds = array<i64: 32, 128>}]} {
    %c0 = arith.constant 0 : index
    %c0_0 = arith.constant 0 : index
    %0 = vector.load %arg1[%c0, %c0_0] : memref<32x32xf32, #tpu.memory_space<vmem>>, vector<32x32xf32>
    %c0_1 = arith.constant 0 : index
    %c0_2 = arith.constant 0 : index
    %1 = vector.load %arg2[%c0_1, %c0_2] : memref<32x128xf32, #tpu.memory_space<vmem>>, vector<32x128xf32>
    %cst = arith.constant dense<0.000000e+00> : vector<32x128xf32>
    %2 = tpu.matmul %0, %1, %cst {dimension_numbers = #tpu.dot_dimension_numbers<[1], [0], [0], [1], [0, 0, 1, 1], [], []>} : vector<32x32xf32>, vector<32x128xf32>, vector<32x128xf32> -> vector<32x128xf32>
    %c0_3 = arith.constant 0 : index
    %c0_4 = arith.constant 0 : index
    %3 = vector.load %arg3[%c0_3, %c0_4] : memref<32x128xf32, #tpu.memory_space<vmem>>, vector<32x128xf32>
    tpu.vector_store %arg3[%c0_3, %c0_4], %2 {strides = array<i32>} : memref<32x128xf32, #tpu.memory_space<vmem>>, vector<32x128xf32>,
    return
  }
  func.func @transform_0(%arg0: i32) -> (i32, i32) {
    %c0_i32 = arith.constant 0 : i32
    %c0_i32_0 = arith.constant 0 : i32
    %c0_i32_1 = arith.constant 0 : i32
    return %c0_i32, %c0_i32_0 : i32, i32
  }
  func.func @transform_1(%arg0: i32) -> (i32, i32) {
    %c0_i32 = arith.constant 0 : i32
    %c0_i32_0 = arith.constant 0 : i32
    return %c0_i32, %arg0 : i32, i32
  }
  func.func @transform_2(%arg0: i32) -> (i32, i32) {
    %c0_i32 = arith.constant 0 : i32
    %c0_i32_0 = arith.constant 0 : i32
    return %c0_i32, %arg0 : i32, i32
  }
}

</mosaic_0001>

<bundles_post_ra>
// kernel: _lambda_.1
= control target key start
LH: loop header
LB: loop body
LE: loop exit
PB: predicated region body
PF: predicated region fallthrough
CT: control target
= control target key end

     0   :  { %s515_s9 = smov 0   ;;  %s517_s10 = smov 0   ;;  %s591_s0 = inlined_call_operand.vmem [shape: f32[32,32], index: 0, kind: input, shape index: {}]   ;;  %s592_s1 = inlined_call_operand.vmem [shape: f32[32,256], index: 1, kind: input, shape index: {}]   ;;  %s593_s2 = inlined_call_operand.vmem [shape: f32[32,256], index: 2, kind: output, shape index: {}]  }
   0x1   :  { %s519_s11 = smov 0  }
   0x2 LB: > { %s405_s12 = sadd.s32 4294967295, %s498_s11   ;;  %s532_s13 = sadd.s32 1, %s498_s11   ;;  %s498_s11 = sphi %s519_s11, %s597_s11   ;;  %s494_s10 = sphi %s517_s10, %s596_s10   ;;  %s490_s9 = sphi %s515_s9, %s595_s9  }
   0x3   : > { %s37_s14 = ssub.s32 %s498_s11, %s532_s13  ;;  %s40_s15 = sadd.s32 1, %s494_s10 }
   0x4   : > { %p38_p0 = scmp.eq.s32.totalorder %s37_s14, 0  ;;  %p47_p1 = scmp.ne.s32.totalorder %s494_s10, %s490_s9 }
   0x5   : > { %p48_p2 = scmp.eq.s32.totalorder %s498_s11, 0  ;;  %p77_p3 = scmp.eq.s32.totalorder %s405_s12, 1 }
   0x6   : > { %s543_s16 = scalar_select %p38_p0, %s494_s10, %s40_s15  }
   0x7   : > { %p49_p4 = por %p48_p2, %p47_p1  ;;  %p545_p5 = por %p77_p3, %p47_p1 }
   0x8   : > { %p408_p6 = scmp.ge.s32.totalorder %s498_s11, 2 }
   0xa   : > { %102 = sbr.rel (%p408_p6) target bundleno = 21 (0x15), region = 20 }
   0xf   : > { %105 = sbr.rel (!%p49_p4) target bundleno = 21 (0x15), region = 24  ;;  %s107_s18 = sand.u32 (%p49_p4), 1, %s494_s10  }
  0x10   : > { %s410_s19 = sshll.u32 (%p49_p4), %s498_s11, 3  ;;  %s409_s20 = sshll.u32 (%p49_p4), %s107_s18, 5 }
  0x11   : > { %s111_s23 = scalar_lea.vmem (%p49_p4), %s592_s1, %s410_s19  ;;  %s109_s24 = scalar_lea.vmem (%p49_p4), [#allocation2], %s409_s20 }
  0x12   : > { %v146_v0 = vld [vmem:[%s111_s23] sm:$0xff] (%p49_p4)  ;;  %v148_v1 = vld [vmem:[%s111_s23 + $0x10] sm:$0xff] (%p49_p4) }
  0x13   : > { %v150_v2 = vld [vmem:[%s111_s23 + $0x20] sm:$0xff] (%p49_p4)  ;;  %147 = vst [vmem:[%s109_s24] sm:$0xff] (%p49_p4), %v146_v0  ;;  %149 = vst [vmem:[%s109_s24 + $0x8] sm:$0xff] (%p49_p4), %v148_v1  ;;  %v152_v3 = vld [vmem:[%s111_s23 + $0x30] sm:$0xff] (%p49_p4) }
  0x14   : > { %151 = vst [vmem:[%s109_s24 + $0x10] sm:$0xff] %v150_v2  ;;  %153 = vst [vmem:[%s109_s24 + $0x18] sm:$0xff] %v152_v3 }
  0x15 PF: > { %p411_p7 = scmp.ge.s32.totalorder %s498_s11, 1  ;;  %p158_p8 = scmp.lt.s32.totalorder %s498_s11, 3 }
  0x17   : > { %p159_p9 = pnand %p411_p7, %p158_p8 }
  0x18   : > { %s165_s25 = sand.u32 (!%p159_p9), 1, %s490_s9  }
  0x19   : > { %162 = sbr.rel (%p159_p9) target bundleno = 244 (0xf4), region = 62  ;;  %s412_s30 = sshll.u32 (!%p159_p9), %s165_s25, 5 }
  0x1a   : > { %s167_s3 = scalar_lea.vmem (!%p159_p9), [#allocation2], %s412_s30  ;;  %s184_s8 = scalar_lea.vmem (!%p159_p9), [#allocation3], %s412_s30 }
  0x1e   : > { %v185_v4 = vld [vmem:[%s591_s0] sm:$0xff]  ;;  %vm193_vm0 = vcmask 261120   ;;  %v187_v5 = vld [vmem:[%s591_s0 + $0x10] sm:$0xff]  ;;  %v192_v6 = vld [vmem:[%s167_s3 + $0x18] sm:$0xff]  ;;  %s419_s9 = sshll.u32 (%p545_p5), %s405_s12, 3 }
  0x1f   : > { %438 = vmatprep.mubr.msk.f32.mxu0 %vm193_vm0, %v185_v4  ;;  %441 = vmatprep.mubr.msk.f32.mxu1 %vm193_vm0, %v187_v5  ;;  %v191_v7 = vld [vmem:[%s167_s3 + $0x10] sm:$0xff]  ;;  %v190_v8 = vld [vmem:[%s167_s3 + $0x8] sm:$0xff]  ;;  %v189_v9 = vld [vmem:[%s167_s3] sm:$0xff]  ;;  %s303_s18 = scalar_lea.vmem (%p545_p5), %s593_s2, %s419_s9 }
  0x20   : > { %430 = vmatprep.subr.mxu0 %v192_v6  ;;  %444 = vmatprep.subr.mxu1 %v192_v6  ;;  %v186_v10 = vld [vmem:[%s591_s0 + $0x8] sm:$0xff]  ;;  %v188_v11 = vld [vmem:[%s591_s0 + $0x18] sm:$0xff] }
  0x21   : > { %431 = vmatpush3.msra.mxu0 %v192_v6  ;;  %448 = vmatpush3.msra.mxu1 %v192_v6 }
  0x22   : > { %432 = vmatprep.subr.mxu0 %v191_v7  ;;  %445 = vmatprep.subr.mxu1 %v191_v7 }
  0x23   : > { %433 = vmatpush3.msra.mxu0 %v191_v7  ;;  %449 = vmatpush3.msra.mxu1 %v191_v7 }
  0x24   : > { %434 = vmatprep.subr.mxu0 %v190_v8  ;;  %446 = vmatprep.subr.mxu1 %v190_v8 }
  0x25   : > { %435 = vmatpush3.msra.mxu0 %v190_v8  ;;  %450 = vmatpush3.msra.mxu1 %v190_v8 }
  0x26   : > { %436 = vmatprep.subr.mxu0 %v189_v9  ;;  %447 = vmatprep.subr.mxu1 %v189_v9 }
  0x27   : > { %437 = vmatpush3.msra.mxu0 %v189_v9  ;;  %451 = vmatpush3.msra.mxu1 %v189_v9 }
  0x28   : > { %439 = vmatmul.mubr.msk.f32.vlgmr.msra.gmra.mxu0 %vm193_vm0, %v186_v10  ;;  %442 = vmatmul.mubr.msk.f32.vlgmr.msra.gmra.mxu1 %vm193_vm0, %v188_v11 }
  0xe7   : > { %301 = sbr.rel (!%p545_p5) target bundleno = 244 (0xf4), region = 70 }
  0xe8   : > { %v440_v12 = vpop.f32.mrf.mxu0  ;;  %v443_v13 = vpop.f32.mrf.mxu1 }
  0xe9   : > { %292 = vst [vmem:[%s184_s8 + $0x8] sm:$0xff] %v440_v12  ;;  %294 = vst [vmem:[%s184_s8 + $0x18] sm:$0xff] %v443_v13 }
  0xea   : > { %v272_v14 = vpop.f32.mrf.mxu0  ;;  %v282_v15 = vpop.f32.mrf.mxu1 }
  0xeb   : > { %291 = vst [vmem:[%s184_s8] sm:$0xff] %v272_v14  ;;  %293 = vst [vmem:[%s184_s8 + $0x10] sm:$0xff] %v282_v15 }
  0xf0   : > { %v340_v17 = vld [vmem:[%s184_s8 + $0x8] sm:$0xff]  ;;  %v344_v19 = vld [vmem:[%s184_s8 + $0x18] sm:$0xff] }
  0xf1   : > { %341 = vst [vmem:[%s303_s18 + $0x10] sm:$0xff] %v340_v17  ;;  %345 = vst [vmem:[%s303_s18 + $0x30] sm:$0xff] %v344_v19 }
  0xf2   : > { %v338_v16 = vld [vmem:[%s184_s8] sm:$0xff]  ;;  %v342_v18 = vld [vmem:[%s184_s8 + $0x10] sm:$0xff] }
  0xf3   : > { %339 = vst [vmem:[%s303_s18] sm:$0xff] %v338_v16  ;;  %343 = vst [vmem:[%s303_s18 + $0x20] sm:$0xff] %v342_v18 }
  0xf4 PF: > { %p9_p10 = scmp.ge.s32.totalorder %s532_s13, 4   ;;  %s595_s9 = smov %s494_s10 }
  0xf5   : > { %s596_s10 = smov %s543_s16  ;;  %s597_s11 = smov %s532_s13 }
  0xf6   :  { %11 = sbr.rel (!%p9_p10) target bundleno = 2 (0x2), region = 139 }

</bundles_post_ra>
